<compile_context>
chip_gen: v5e
topology: v5e:2x2
jax: 0.10.0
libtpu: 0.0.40
codegen_flags: <defaults>
</compile_context>

<pallas_src>
import functools

import jax
import jax.numpy as jnp
from jax.experimental import pallas as pl
from jax.experimental.pallas import tpu as pltpu


_LANE = 128


def _round_up(v, m):
    return ((v + m - 1) // m) * m


def _pad_axis(x, target, axis):
    pad = target - x.shape[axis]
    if pad <= 0:
        return x
    cfg = [(0, 0)] * x.ndim
    cfg[axis] = (0, pad)
    return jnp.pad(x, cfg)


@functools.lru_cache(maxsize=1)
def _vmem_budget():
    """(vmem_limit_bytes, working tile budget) -- generation aware."""
    cap = None
    try:
        info = pltpu.get_tpu_info()
        cap = getattr(info, "vmem_capacity_bytes", None)
    except Exception:
        cap = None
    if cap is None:
        cap = 64 * 1024 * 1024
    if cap >= 100 * 1024 * 1024:            # v5e / v6e: 128 MiB physical VMEM
        return 100 * 1024 * 1024, 90 * 1024 * 1024
    return 48 * 1024 * 1024, 40 * 1024 * 1024   # v7x: 64 MiB physical VMEM


def _largest_row_tile(n_p, cap_rows, *, step=32, max_tile=512):
    """Largest multiple of `step` that divides n_p and is <= cap (no full-N fallback).
    n_p is always a multiple of 128, so `step` always divides it."""
    cap_rows = max(step, min(int(cap_rows), max_tile, n_p))
    best, t = step, step
    while t <= cap_rows:
        if n_p % t == 0:
            best = t
        t += step
    return best


def _attention_rows(n_p, out_pad, budget, requested=None):
    if requested is not None:
        if n_p % requested != 0 or requested % 8 != 0:
            raise ValueError("block_rows must divide padded N and be a multiple of 8")
        return requested
    fixed = 4 * n_p * out_pad + 16 * n_p          # resident bf16 h (double-buffered) + neigh row
    per_row = 20 * n_p + 12 * out_pad + 256       # int8 adj + bf16 M (db) + f32 temps + outputs
    return _largest_row_tile(n_p, (budget - fixed) // per_row)


def _linear_rows(n_p, f_p, out_pad, budget):
    fixed = 4 * f_p * out_pad + 4 * out_pad * _LANE     # bf16 W + a (double-buffered)
    per_row = 10 * f_p + 12 * out_pad + 8 * _LANE       # x tiles + h/attn outputs + accum
    return _largest_row_tile(n_p, (budget - fixed) // per_row, max_tile=1024)


def _decode_rows(n_p, ep, budget, out_itemsize=4):
    fixed = 4 * ep * n_p                                 # resident bf16 Z^T (double-buffered)
    per_row = (2 * out_itemsize + 4) * n_p + 8 * ep
    return _largest_row_tile(n_p, (budget - fixed) // per_row)


# ----------------------------------------------------------------------------
# Kernels
# ----------------------------------------------------------------------------
def _gat_linear_kernel(x_ref, w_ref, a_ref, h_ref, attn_ref):
    x = x_ref[...]
    if x.dtype != jnp.bfloat16:
        x = x.astype(jnp.bfloat16)
    # h = X @ W on the MXU, bf16 inputs / f32 accumulation.
    h32 = jnp.dot(x, w_ref[...], preferred_element_type=jnp.float32)
    h_bf = h32.astype(jnp.bfloat16)
    h_ref[...] = h_bf
    # Both attention-logit vectors in one matmul; a is zero-padded to 128 columns
    # so this output store is lane-dense.
    attn_ref[...] = jnp.dot(h_bf, a_ref[...], preferred_element_type=jnp.float32)


def _gat_attention_kernel(adj_ref, m_ref, s_ref, n_ref, h_ref, o_ref, *,
                          alpha, normalize):
    mask = adj_ref[...] > 0                              # int8 {0,1} mask, computed once
    m = m_ref[...].astype(jnp.float32)                   # bf16 -> f32

    # logits[i,j] = LeakyReLU((s_i + n_j) * M_ij)
    dense = (s_ref[...] + n_ref[...]) * m
    if 0.0 <= alpha <= 1.0:
        dense = jnp.maximum(dense, jnp.float32(alpha) * dense)   # LeakyReLU, 2 VPU ops
    else:
        dense = jnp.where(dense > 0, dense, jnp.float32(alpha) * dense)

    # -9e15 masking (matches reference; fully-masked rows degrade to uniform softmax).
    masked = jnp.where(mask, dense, jnp.float32(-9e15))
    mx = jnp.max(masked, axis=1, keepdims=True)
    e = jnp.exp(masked - mx)
    att = e * pl.reciprocal(jnp.sum(e, axis=1, keepdims=True), approx=True)

    # Aggregation on the MXU; h is already resident in bf16.
    hp = jnp.dot(att.astype(jnp.bfloat16), h_ref[...],
                 preferred_element_type=jnp.float32)
    hp = jnp.where(hp > 0, hp, jnp.exp(jnp.minimum(hp, 0.0)) - 1.0)   # ELU

    if normalize:
        # F.normalize(p=2, dim=1): x * rsqrt(max(sum x^2, eps^2))
        ss = jnp.sum(hp * hp, axis=1, keepdims=True)
        hp = hp * jax.lax.rsqrt(jnp.maximum(ss, jnp.float32(1e-24)))

    o_ref[...] = hp.astype(o_ref.dtype)


def _decode_kernel(zrow_ref, zt_ref, out_ref):
    # sigmoid(Z_rows @ Z^T); Z^T is pre-transposed on the host -> native (K,N) MXU feed.
    logits = jnp.dot(zrow_ref[...], zt_ref[...], preferred_element_type=jnp.float32)
    out_ref[...] = jax.nn.sigmoid(logits).astype(out_ref.dtype)


# ----------------------------------------------------------------------------
# pallas_call wrappers
# ----------------------------------------------------------------------------
def _gat_linear(feat, w, a, tl, cparams):
    n_p, f_p = feat.shape
    out_pad = w.shape[1]
    return pl.pallas_call(
        _gat_linear_kernel,
        out_shape=(jax.ShapeDtypeStruct((n_p, out_pad), jnp.bfloat16),
                   jax.ShapeDtypeStruct((n_p, _LANE), jnp.float32)),
        grid_spec=pltpu.PrefetchScalarGridSpec(
            num_scalar_prefetch=0,
            grid=(n_p // tl,),
            in_specs=[
                pl.BlockSpec((tl, f_p), lambda i: (i, 0)),          # X row block
                pl.BlockSpec((f_p, out_pad), lambda i: (0, 0)),     # W (resident, bf16)
                pl.BlockSpec((out_pad, _LANE), lambda i: (0, 0)),   # [a_self|a_neigh|0...]
            ],
            out_specs=(
                pl.BlockSpec((tl, out_pad), lambda i: (i, 0)),      # h rows (bf16)
                pl.BlockSpec((tl, _LANE), lambda i: (i, 0)),        # logits rows (lane dense)
            )),
        compiler_params=cparams,
    )(feat, w, a)


def _gat_attention(adj_mask, m, s_col, n_row, h, tq, cparams, *,
                   alpha, normalize, out_dtype):
    n_p = adj_mask.shape[0]
    out_pad = h.shape[1]
    kern = functools.partial(_gat_attention_kernel, alpha=alpha, normalize=normalize)
    return pl.pallas_call(
        kern,
        out_shape=jax.ShapeDtypeStruct((n_p, out_pad), out_dtype),
        grid_spec=pltpu.PrefetchScalarGridSpec(
            num_scalar_prefetch=0,
            grid=(n_p // tq,),
            in_specs=[
                pl.BlockSpec((tq, n_p), lambda i: (i, 0)),          # adj mask block (int8)
                pl.BlockSpec((tq, n_p), lambda i: (i, 0)),          # M block (bf16)
                pl.BlockSpec((tq, 1), lambda i: (i, 0)),            # self logits (col)
                pl.BlockSpec((1, n_p), lambda i: (0, 0)),           # neigh logits (resident)
                pl.BlockSpec((n_p, out_pad), lambda i: (0, 0)),     # h (resident, bf16)
            ],
            out_specs=pl.BlockSpec((tq, out_pad), lambda i: (i, 0))),
        compiler_params=cparams,
    )(adj_mask, m, s_col, n_row, h)


def _decode(z_rows, z_t, td, cparams, *, out_dtype):
    n_p, ep = z_rows.shape
    return pl.pallas_call(
        _decode_kernel,
        out_shape=jax.ShapeDtypeStruct((n_p, n_p), out_dtype),
        grid_spec=pltpu.PrefetchScalarGridSpec(
            num_scalar_prefetch=0,
            grid=(n_p // td,),
            in_specs=[
                pl.BlockSpec((td, ep), lambda i: (i, 0)),           # Z row block (bf16)
                pl.BlockSpec((ep, n_p), lambda i: (0, 0)),          # Z^T (resident, bf16)
            ],
            out_specs=pl.BlockSpec((td, n_p), lambda i: (i, 0))),   # A_pred rows (lane dense)
        compiler_params=cparams,
    )(z_rows, z_t)


# ----------------------------------------------------------------------------
# Forward pass
# ----------------------------------------------------------------------------
def daegc_forward(x, adj, M, params, *, alpha, block_rows=None,
                  decode_dtype=jnp.float32):
    """DAEGC forward: returns (A_pred, z) matching the PyTorch module."""
    N, feat = x.shape
    hidden = params["W1"].shape[1]
    embed = params["W2"].shape[1]

    # Zero-pad node count / feature / hidden / embed dims to lane-dense widths.
    # Padding is exact: padded adj/M entries are 0 (masked out), padded weight
    # rows/cols are 0, so every real output entry is unchanged.
    n_p = _round_up(N, _LANE)
    f_p = _round_up(feat, _LANE)
    hidden_p = _round_up(hidden, _LANE)
    embed_p = _round_up(embed, _LANE)

    vmem_limit, budget = _vmem_budget()
    cparams = pltpu.CompilerParams(dimension_semantics=("parallel",),
                                   vmem_limit_bytes=vmem_limit)

    # ---- compress + pad the dominant HBM streams ----
    x_p = _pad_axis(_pad_axis(x.astype(jnp.float32), n_p, 0), f_p, 1)
    adj_mask = _pad_axis(_pad_axis((adj > 0).astype(jnp.int8), n_p, 0), n_p, 1)
    m_bf = _pad_axis(_pad_axis(M, n_p, 0), n_p, 1).astype(jnp.bfloat16)

    # ---- parameters: bf16, padded; attention vectors padded to 128 lanes ----
    w1 = _pad_axis(_pad_axis(params["W1"], f_p, 0), hidden_p, 1).astype(jnp.bfloat16)
    a1 = jnp.concatenate([params["a_self1"], params["a_neigh1"]], axis=1)
    a1 = _pad_axis(_pad_axis(a1, hidden_p, 0), _LANE, 1).astype(jnp.bfloat16)
    w2 = _pad_axis(_pad_axis(params["W2"], hidden_p, 0), embed_p, 1).astype(jnp.bfloat16)
    a2 = jnp.concatenate([params["a_self2"], params["a_neigh2"]], axis=1)
    a2 = _pad_axis(_pad_axis(a2, embed_p, 0), _LANE, 1).astype(jnp.bfloat16)

    # ---- tile selection (dtype-aware, per stage) ----
    tq = _attention_rows(n_p, max(hidden_p, embed_p), budget, block_rows)
    tl1 = _linear_rows(n_p, f_p, hidden_p, budget)
    tl2 = _linear_rows(n_p, hidden_p, embed_p, budget)
    td = _decode_rows(n_p, embed_p, budget)

    # ---- GAT layer 1 ----
    h1, attn1 = _gat_linear(x_p, w1, a1, tl1, cparams)
    s1 = attn1[:, 0:1]                      # (n_p, 1) self logits
    n1 = attn1[:, 1].reshape(1, n_p)        # (1, n_p) neighbour logits
    h1_out = _gat_attention(adj_mask, m_bf, s1, n1, h1, tq, cparams,
                            alpha=alpha, normalize=False, out_dtype=jnp.bfloat16)

    # ---- GAT layer 2 (+ fused row-wise L2 normalize) ----
    h2, attn2 = _gat_linear(h1_out, w2, a2, tl2, cparams)
    s2 = attn2[:, 0:1]
    n2 = attn2[:, 1].reshape(1, n_p)
    z_pad = _gat_attention(adj_mask, m_bf, s2, n2, h2, tq, cparams,
                           alpha=alpha, normalize=True, out_dtype=jnp.float32)

    # ---- decode: A_pred = sigmoid(Z Z^T), Z^T pre-transposed once on the host ----
    z_bf = z_pad.astype(jnp.bfloat16)
    z_t = z_bf.T
    A_pred_p = _decode(z_bf, z_t, td, cparams, out_dtype=decode_dtype)

    return A_pred_p[:N, :N], z_pad[:N, :embed]


def init_params(key, num_features, hidden_size, embedding_size):
    ks = jax.random.split(key, 6)

    def xavier(k, shape):
        fan_in, fan_out = shape[0], shape[1]
        bound = jnp.sqrt(6.0 / (fan_in + fan_out))
        return jax.random.uniform(k, shape, jnp.float32, -bound, bound)

    return {
        "W1": xavier(ks[0], (num_features, hidden_size)),
        "a_self1": xavier(ks[1], (hidden_size, 1)),
        "a_neigh1": xavier(ks[2], (hidden_size, 1)),
        "W2": xavier(ks[3], (hidden_size, embedding_size)),
        "a_self2": xavier(ks[4], (embedding_size, 1)),
        "a_neigh2": xavier(ks[5], (embedding_size, 1)),
    }


if __name__ == "__main__":
    # Small deterministic example: N=256 nodes, 64 features, hidden=16, embed=8.
    N, num_features, hidden_size, embedding_size = 256, 64, 16, 8
    alpha = 0.2

    key = jax.random.PRNGKey(0)
    kx, kadj, kp = jax.random.split(key, 3)

    x = jax.random.normal(kx, (N, num_features), jnp.float32)

    # Symmetric binary adjacency with self-loops.
    raw = jax.random.uniform(kadj, (N, N), jnp.float32)
    adj = (raw + raw.T > 1.0).astype(jnp.float32)
    adj = jnp.maximum(adj, jnp.eye(N, dtype=jnp.float32))

    # M: transition-like proximity matrix (row-normalized adjacency stand-in).
    M = adj / jnp.maximum(jnp.sum(adj, axis=1, keepdims=True), 1.0)

    params = init_params(kp, num_features, hidden_size, embedding_size)

    # block_rows=128 -> 2 attention row blocks, exercising the tiled pipeline.
    A_pred, z = daegc_forward(x, adj, M, params, alpha=alpha, block_rows=128)
    jax.block_until_ready((A_pred, z))

    assert A_pred.shape == (N, N) and z.shape == (N, embedding_size)
    assert bool(jnp.all(jnp.isfinite(A_pred))) and bool(jnp.all(jnp.isfinite(z)))
    # z rows are L2-normalized by construction (F.normalize semantics).
    norms = jnp.sqrt(jnp.sum(z.astype(jnp.float32) ** 2, axis=1))
    assert bool(jnp.max(jnp.abs(norms - 1.0)) < 1e-2)
    print("KERNEL_OK")
</pallas_src>

<mosaic_0001>
module attributes {stable_mosaic.version = 11 : i64} {
  func.func @_gat_linear_kernel(%arg0: i32, %arg1: memref<256x128xf32, #tpu.memory_space<vmem>>, %arg2: memref<128x128xbf16, #tpu.memory_space<vmem>>, %arg3: memref<128x128xbf16, #tpu.memory_space<vmem>>, %arg4: memref<256x128xbf16, #tpu.memory_space<vmem>>, %arg5: memref<256x128xf32, #tpu.memory_space<vmem>>) attributes {dimension_semantics = [#tpu.dimension_semantics<parallel>], iteration_bounds = array<i64: 1>, scalar_prefetch = 0 : i64, scratch_operands = 0 : i64, tpu.core_type = #tpu.core_type<tc>, window_params = [{transform_indices = @transform_0, window_bounds = array<i64: 256, 128>}, {pipeline_mode = #tpu.pipeline_mode<synchronous>, transform_indices = @transform_1, window_bounds = array<i64: 128, 128>}, {pipeline_mode = #tpu.pipeline_mode<synchronous>, transform_indices = @transform_2, window_bounds = array<i64: 128, 128>}, {transform_indices = @transform_3, window_bounds = array<i64: 256, 128>}, {transform_indices = @transform_4, window_bounds = array<i64: 256, 128>}]} {
    %c0 = arith.constant 0 : index
    %c0_0 = arith.constant 0 : index
    %0 = vector.load %arg1[%c0, %c0_0] : memref<256x128xf32, #tpu.memory_space<vmem>>, vector<256x128xf32>
    %1 = arith.truncf %0 : vector<256x128xf32> to vector<256x128xbf16>
    %c0_1 = arith.constant 0 : index
    %c0_2 = arith.constant 0 : index
    %2 = vector.load %arg2[%c0_1, %c0_2] : memref<128x128xbf16, #tpu.memory_space<vmem>>, vector<128x128xbf16>
    %cst = arith.constant dense<0.000000e+00> : vector<256x128xf32>
    %3 = tpu.matmul %1, %2, %cst {dimension_numbers = #tpu.dot_dimension_numbers<[1], [0], [0], [1], [0, 0, 1, 1], [], []>} : vector<256x128xbf16>, vector<128x128xbf16>, vector<256x128xf32> -> vector<256x128xf32>
    %4 = arith.truncf %3 : vector<256x128xf32> to vector<256x128xbf16>
    %c0_3 = arith.constant 0 : index
    %c0_4 = arith.constant 0 : index
    %5 = vector.load %arg4[%c0_3, %c0_4] : memref<256x128xbf16, #tpu.memory_space<vmem>>, vector<256x128xbf16>
    tpu.vector_store %arg4[%c0_3, %c0_4], %4 {strides = array<i32>} : memref<256x128xbf16, #tpu.memory_space<vmem>>, vector<256x128xbf16>,
    %c0_5 = arith.constant 0 : index
    %c0_6 = arith.constant 0 : index
    %6 = vector.load %arg3[%c0_5, %c0_6] : memref<128x128xbf16, #tpu.memory_space<vmem>>, vector<128x128xbf16>
    %cst_7 = arith.constant dense<0.000000e+00> : vector<256x128xf32>
    %7 = tpu.matmul %4, %6, %cst_7 {dimension_numbers = #tpu.dot_dimension_numbers<[1], [0], [0], [1], [0, 0, 1, 1], [], []>} : vector<256x128xbf16>, vector<128x128xbf16>, vector<256x128xf32> -> vector<256x128xf32>
    %c0_8 = arith.constant 0 : index
    %c0_9 = arith.constant 0 : index
    %8 = vector.load %arg5[%c0_8, %c0_9] : memref<256x128xf32, #tpu.memory_space<vmem>>, vector<256x128xf32>
    tpu.vector_store %arg5[%c0_8, %c0_9], %7 {strides = array<i32>} : memref<256x128xf32, #tpu.memory_space<vmem>>, vector<256x128xf32>,
    return
  }
  func.func @transform_0(%arg0: i32) -> (i32, i32) {
    %c0_i32 = arith.constant 0 : i32
    %c0_i32_0 = arith.constant 0 : i32
    return %arg0, %c0_i32 : i32, i32
  }
  func.func @transform_1(%arg0: i32) -> (i32, i32) {
    %c0_i32 = arith.constant 0 : i32
    %c0_i32_0 = arith.constant 0 : i32
    %c0_i32_1 = arith.constant 0 : i32
    return %c0_i32, %c0_i32_0 : i32, i32
  }
  func.func @transform_2(%arg0: i32) -> (i32, i32) {
    %c0_i32 = arith.constant 0 : i32
    %c0_i32_0 = arith.constant 0 : i32
    %c0_i32_1 = arith.constant 0 : i32
    return %c0_i32, %c0_i32_0 : i32, i32
  }
  func.func @transform_3(%arg0: i32) -> (i32, i32) {
    %c0_i32 = arith.constant 0 : i32
    %c0_i32_0 = arith.constant 0 : i32
    return %arg0, %c0_i32 : i32, i32
  }
  func.func @transform_4(%arg0: i32) -> (i32, i32) {
    %c0_i32 = arith.constant 0 : i32
    %c0_i32_0 = arith.constant 0 : i32
    return %arg0, %c0_i32 : i32, i32
  }
}

</mosaic_0001>

<bundles_post_ra>
// kernel: tpu_custom_call.1
= control target key start
LH: loop header
LB: loop body
LE: loop exit
PB: predicated region body
PF: predicated region fallthrough
CT: control target
= control target key end

     0   :  { %10 = vsyncpa [#allocation3], 0  ;;  %s1041_s0 = inlined_call_operand.hbm [shape: f32[256,128], index: 0, kind: input, shape index: {}]   ;;  %s1042_s1 = inlined_call_operand.hbm [shape: bf16[128,128], index: 1, kind: input, shape index: {}]   ;;  %s1043_s2 = inlined_call_operand.hbm [shape: bf16[128,128], index: 2, kind: input, shape index: {}]   ;;  %s1044_s3 = inlined_call_operand.hbm [shape: bf16[256,128], index: 3, kind: output, shape index: {0}]   ;;  %s1045_s4 = inlined_call_operand.hbm [shape: f32[256,128], index: 4, kind: output, shape index: {1}]  }
   0x1   :  { %11 = vsyncpa [#allocation6], 0 }
   0x2   :  { %12 = vsyncpa [#allocation4], 0  ;;  %s31_s17 = sshll.u32 %s1042_s1, 4  ;;  %s32_s17 = int_to_ptr.hbm [resolvable:$true] %s31_s17 }
   0x3   :  { %13 = vsyncpa [#allocation10], 0  ;;  %s977_s18 = smov [#allocation5]   ;;  %s18_s22 = sshll.u32 %s1041_s0, 4  ;;  %s19_s22 = int_to_ptr.hbm [resolvable:$true] %s18_s22 }
   0x4   :  { %s33_s19 = sshll.u32 %s977_s18, 4  ;;  %s978_s23 = smov 64   ;;  %s34_s19 = int_to_ptr.vmem [resolvable:$true] %s33_s19 }
   0x5   :  { %s979_s24 = smov 4   ;;  %s980_s25 = smov [#allocation2]  }
   0x6   :  { %39 = dma.hbm_to_vmem [thread:$0]  %s32_s17, 1024, %s34_s19, [#allocation6], %s978_s23, %s978_s23, %s979_s24  }
   0x7   :  { %s20_s26 = sshll.u32 %s980_s25, 4  ;;  %s981_s1 = smov 128   ;;  %s21_s26 = int_to_ptr.vmem [resolvable:$true] %s20_s26 }
   0x8   :  { %s982_s27 = smov 8   ;;  %s44_s0 = sshll.u32 %s1043_s2, 4  ;;  %s45_s0 = int_to_ptr.hbm [resolvable:$true] %s44_s0 }
   0x9   :  { %26 = dma.hbm_to_vmem [thread:$0]  %s19_s22, 4096, %s21_s26, [#allocation3], %s981_s1, %s981_s1, %s982_s27  }
   0xa   :  { %s983_s30 = smov [#allocation7]  }
   0xb   :  { %s46_s5 = sshll.u32 %s983_s30, 4  ;;  %s47_s5 = int_to_ptr.vmem [resolvable:$true] %s46_s5 }
   0xc   :  { %52 = dma.hbm_to_vmem [thread:$0]  %s45_s0, 1024, %s47_s5, [#allocation6], %s978_s23, %s978_s23, %s979_s24  }
   0xd   :  { %969 = dma.done.wait [#allocation3], 4096  }
   0xe   :  { %970 = vsyncadd [#allocation3], 4294963200 }
   0xf   :  { %971 = dma.done.wait [#allocation6], 2048  }
  0x10   :  { %972 = vsyncadd [#allocation6], 4294965248  ;;  %v720_v0 = vld [vmem:[#allocation5 + $0x38] sm:$0xff]  ;;  %v719_v1 = vld [vmem:[#allocation5 + $0x30] sm:$0xff]  ;;  %s984_s2 = smov [#allocation8]   ;;  %s617_s9 = sshll.u32 %s1044_s3, 4  ;;  %s618_s9 = int_to_ptr.hbm [resolvable:$true] %s617_s9 }
  0x11   :  { %177 = vmatpush.bf16.msra.mxu0 %v720_v0  ;;  %824 = vmatpush.bf16.msra.mxu2 %v720_v0  ;;  %v718_v2 = vld [vmem:[#allocation5 + $0x28] sm:$0xff]  ;;  %v717_v3 = vld [vmem:[#allocation5 + $0x20] sm:$0xff]  ;;  %v716_v4 = vld [vmem:[#allocation5 + $0x18] sm:$0xff]  ;;  %s615_s6 = sshll.u32 %s984_s2, 4  ;;  %s985_s3 = smov [#allocation9]   ;;  %s616_s6 = int_to_ptr.vmem [resolvable:$true] %s615_s6 }
  0x12   :  { %v715_v5 = vld [vmem:[#allocation5 + $0x10] sm:$0xff]  ;;  %v714_v6 = vld [vmem:[#allocation5 + $0x8] sm:$0xff]  ;;  %v713_v7 = vld [vmem:[#allocation5] sm:$0xff]  ;;  %s628_s10 = sshll.u32 %s985_s3, 4  ;;  %s630_s13 = sshll.u32 %s1045_s4, 4  ;;  %s629_s10 = int_to_ptr.vmem [resolvable:$true] %s628_s10  ;;  %s631_s13 = int_to_ptr.hbm [resolvable:$true] %s630_s13 }
  0x13   :  { %v65_v8 = vld [vmem:[#allocation2] sm:$0xff]  ;;  %v66_v9 = vld [vmem:[#allocation2 + $0x8] sm:$0xff]  ;;  %v67_v14 = vld [vmem:[#allocation2 + $0x10] sm:$0xff] }
  0x14   :  { %v81_v10 = vld [vmem:[#allocation2 + $0x80] sm:$0xff]  ;;  %v82_v11 = vld [vmem:[#allocation2 + $0x88] sm:$0xff]  ;;  %v97_v12 = vpack.c.bf16 %v66_v9, %v65_v8  ;;  %v68_v15 = vld [vmem:[#allocation2 + $0x18] sm:$0xff] }
  0x15   :  { %178 = vmatpush.bf16.msra.mxu0 %v719_v1  ;;  %825 = vmatpush.bf16.msra.mxu2 %v719_v1  ;;  %v105_v13 = vpack.c.bf16 %v82_v11, %v81_v10  ;;  %v83_v16 = vld [vmem:[#allocation2 + $0x90] sm:$0xff]  ;;  %v84_v17 = vld [vmem:[#allocation2 + $0x98] sm:$0xff]  ;;  %v98_v18 = vpack.c.bf16 %v68_v15, %v67_v14  ;;  %v69_v20 = vld [vmem:[#allocation2 + $0x20] sm:$0xff] }
  0x16   :  { %v106_v19 = vpack.c.bf16 %v84_v17, %v83_v16  ;;  %v70_v21 = vld [vmem:[#allocation2 + $0x28] sm:$0xff]  ;;  %v85_v22 = vld [vmem:[#allocation2 + $0xa0] sm:$0xff]  ;;  %v71_v26 = vld [vmem:[#allocation2 + $0x30] sm:$0xff] }
  0x17   :  { %v86_v23 = vld [vmem:[#allocation2 + $0xa8] sm:$0xff]  ;;  %v99_v24 = vpack.c.bf16 %v70_v21, %v69_v20  ;;  %v72_v27 = vld [vmem:[#allocation2 + $0x38] sm:$0xff]  ;;  %v87_v28 = vld [vmem:[#allocation2 + $0xb0] sm:$0xff] }
  0x18   :  { %v107_v25 = vpack.c.bf16 %v86_v23, %v85_v22  ;;  %v88_v29 = vld [vmem:[#allocation2 + $0xb8] sm:$0xff]  ;;  %v100_v30 = vpack.c.bf16 %v72_v27, %v71_v26  ;;  %v73_v32 = vld [vmem:[#allocation2 + $0x40] sm:$0xff]  ;;  %v74_v33 = vld [vmem:[#allocation2 + $0x48] sm:$0xff] }
  0x19   :  { %179 = vmatpush.bf16.msra.mxu0 %v718_v2  ;;  %826 = vmatpush.bf16.msra.mxu2 %v718_v2  ;;  %v108_v31 = vpack.c.bf16 %v88_v29, %v87_v28  ;;  %v89_v34 = vld [vmem:[#allocation2 + $0xc0] sm:$0xff]  ;;  %v90_v35 = vld [vmem:[#allocation2 + $0xc8] sm:$0xff]  ;;  %v101_v36 = vpack.c.bf16 %v74_v33, %v73_v32  ;;  %v728_v38 = vld [vmem:[#allocation7 + $0x38] sm:$0xff] }
  0x1a   :  { %v109_v37 = vpack.c.bf16 %v90_v35, %v89_v34  ;;  %490 = vmatpush.bf16.msra.mxu1 %v728_v38  ;;  %832 = vmatpush.bf16.msra.mxu3 %v728_v38  ;;  %v75_v39 = vld [vmem:[#allocation2 + $0x50] sm:$0xff]  ;;  %v76_v40 = vld [vmem:[#allocation2 + $0x58] sm:$0xff]  ;;  %v726_v46 = vld [vmem:[#allocation7 + $0x28] sm:$0xff] }
  0x1b   :  { %v91_v41 = vld [vmem:[#allocation2 + $0xd0] sm:$0xff]  ;;  %v92_v42 = vld [vmem:[#allocation2 + $0xd8] sm:$0xff]  ;;  %v102_v43 = vpack.c.bf16 %v76_v40, %v75_v39  ;;  %v725_v47 = vld [vmem:[#allocation7 + $0x20] sm:$0xff] }
  0x1c   :  { %v110_v44 = vpack.c.bf16 %v92_v42, %v91_v41  ;;  %v727_v45 = vld [vmem:[#allocation7 + $0x30] sm:$0xff]  ;;  %v77_v48 = vld [vmem:[#allocation2 + $0x60] sm:$0xff]  ;;  %v78_v49 = vld [vmem:[#allocation2 + $0x68] sm:$0xff] }
  0x1d   :  { %180 = vmatpush.bf16.msra.mxu0 %v717_v3  ;;  %827 = vmatpush.bf16.msra.mxu2 %v717_v3  ;;  %v93_v50 = vld [vmem:[#allocation2 + $0xe0] sm:$0xff]  ;;  %v94_v51 = vld [vmem:[#allocation2 + $0xe8] sm:$0xff]  ;;  %v724_v52 = vld [vmem:[#allocation7 + $0x18] sm:$0xff]  ;;  %v103_v53 = vpack.c.bf16 %v78_v49, %v77_v48 }
  0x1e   :  { %491 = vmatpush.bf16.msra.mxu1 %v727_v45  ;;  %833 = vmatpush.bf16.msra.mxu3 %v727_v45  ;;  %v111_v54 = vpack.c.bf16 %v94_v51, %v93_v50  ;;  %v723_v55 = vld [vmem:[#allocation7 + $0x10] sm:$0xff]  ;;  %v722_v56 = vld [vmem:[#allocation7 + $0x8] sm:$0xff]  ;;  %v721_v57 = vld [vmem:[#allocation7] sm:$0xff] }
  0x1f   :  { %v79_v58 = vld [vmem:[#allocation2 + $0x70] sm:$0xff]  ;;  %v80_v59 = vld [vmem:[#allocation2 + $0x78] sm:$0xff] }
  0x20   :  { %v95_v60 = vld [vmem:[#allocation2 + $0xf0] sm:$0xff]  ;;  %v96_v61 = vld [vmem:[#allocation2 + $0xf8] sm:$0xff]  ;;  %v104_v62 = vpack.c.bf16 %v80_v59, %v79_v58 }
  0x21   :  { %181 = vmatpush.bf16.msra.mxu0 %v716_v4  ;;  %828 = vmatpush.bf16.msra.mxu2 %v716_v4  ;;  %v112_v63 = vpack.c.bf16 %v96_v61, %v95_v60 }
  0x22   :  { %492 = vmatpush.bf16.msra.mxu1 %v726_v46  ;;  %834 = vmatpush.bf16.msra.mxu3 %v726_v46 }
  0x25   :  { %182 = vmatpush.bf16.msra.mxu0 %v715_v5  ;;  %829 = vmatpush.bf16.msra.mxu2 %v715_v5 }
  0x26   :  { %493 = vmatpush.bf16.msra.mxu1 %v725_v47  ;;  %835 = vmatpush.bf16.msra.mxu3 %v725_v47 }
  0x29   :  { %183 = vmatpush.bf16.msra.mxu0 %v714_v6  ;;  %830 = vmatpush.bf16.msra.mxu2 %v714_v6 }
  0x2a   :  { %494 = vmatpush.bf16.msra.mxu1 %v724_v52  ;;  %836 = vmatpush.bf16.msra.mxu3 %v724_v52 }
  0x2d   :  { %184 = vmatpush.bf16.msra.mxu0 %v713_v7  ;;  %831 = vmatpush.bf16.msra.mxu2 %v713_v7 }
  0x2e   :  { %495 = vmatpush.bf16.msra.mxu1 %v723_v55  ;;  %837 = vmatpush.bf16.msra.mxu3 %v723_v55 }
  0x30   :  { %185 = vmatmul.bf16.vlgmr.msra.gmra.mxu0 %v97_v12  ;;  %225 = vmatmul.bf16.vlgmr.msra.gmra.mxu2 %v105_v13 }
  0x32   :  { %496 = vmatpush.bf16.msra.mxu1 %v722_v56  ;;  %838 = vmatpush.bf16.msra.mxu3 %v722_v56 }
  0x36   :  { %497 = vmatpush.bf16.msra.mxu1 %v721_v57  ;;  %839 = vmatpush.bf16.msra.mxu3 %v721_v57 }
  0x40   :  { %190 = vmatmul.bf16.gmra.mxu0 %v98_v18  ;;  %230 = vmatmul.bf16.gmra.mxu2 %v106_v19 }
  0x50   :  { %195 = vmatmul.bf16.gmra.mxu0 %v99_v24  ;;  %235 = vmatmul.bf16.gmra.mxu2 %v107_v25 }
  0x60   :  { %200 = vmatmul.bf16.gmra.mxu0 %v100_v30  ;;  %240 = vmatmul.bf16.gmra.mxu2 %v108_v31 }
  0x70   :  { %205 = vmatmul.bf16.gmra.mxu0 %v101_v36  ;;  %245 = vmatmul.bf16.gmra.mxu2 %v109_v37 }
  0x80   :  { %210 = vmatmul.bf16.gmra.mxu0 %v102_v43  ;;  %250 = vmatmul.bf16.gmra.mxu2 %v110_v44 }
  0x90   :  { %215 = vmatmul.bf16.gmra.mxu0 %v103_v53  ;;  %255 = vmatmul.bf16.gmra.mxu2 %v111_v54 }
  0xa0   :  { %220 = vmatmul.bf16.gmra.mxu0 %v104_v62  ;;  %260 = vmatmul.bf16.gmra.mxu2 %v112_v63 }
  0xad   :  { %v186_v0 = vpop.f32.mrf.mxu0 }
  0xae   :  { %v266_v1 = vpack.c.bf16 %v186_v0, %v186_v0 }
  0xb0   :  { %v378_v4 = vunpack.c.l.b16 %v266_v1 }
  0xb3   :  { %v226_v2 = vpop.f32.mrf.mxu2 }
  0xb4   :  { %v282_v8 = vpack.c.bf16 %v226_v2, %v226_v2 }
  0xb5   :  { %v188_v3 = vpop.f32.mrf.mxu0 }
  0xb6   :  { %v267_v5 = vpack.c.bf16 %v188_v3, %v188_v3  ;;  %v732_v6 = vpack.c.bf16 %v188_v3, %v186_v0  ;;  %v394_v14 = vunpack.c.l.b16 %v282_v8 }
  0xb8   :  { %733 = vst [vmem:[#allocation8] sm:$0xff] %v732_v6   ;;  %v379_v7 = vunpack.c.l.b16 %v267_v5 }
  0xba   :  { %v410_v9 = vpack.c.b16 %v379_v7, %v378_v4 }
  0xbb   :  { %v228_v10 = vpop.f32.mrf.mxu2 }
  0xbc   :  { %v283_v11 = vpack.c.bf16 %v228_v10, %v228_v10  ;;  %v772_v12 = vpack.c.bf16 %v228_v10, %v226_v2  ;;  %498 = vmatmul.bf16.vlgmr.msra.gmra.mxu1 %v410_v9 }
  0xbd   :  { %v191_v13 = vpop.f32.mrf.mxu0 }
  0xbe   :  { %816 = vst [vmem:[#allocation8 + $0x40] sm:$0xff] %v772_v12   ;;  %v395_v15 = vunpack.c.l.b16 %v283_v11  ;;  %v268_v17 = vpack.c.bf16 %v191_v13, %v191_v13 }
  0xc0   :  { %v418_v16 = vpack.c.b16 %v395_v15, %v394_v14  ;;  %v380_v20 = vunpack.c.l.b16 %v268_v17 }
  0xc2   :  { %538 = vmatmul.bf16.vlgmr.msra.gmra.mxu3 %v418_v16 }
  0xc3   :  { %v231_v18 = vpop.f32.mrf.mxu2 }
  0xc4   :  { %v284_v24 = vpack.c.bf16 %v231_v18, %v231_v18 }
  0xc5   :  { %v193_v19 = vpop.f32.mrf.mxu0 }
  0xc6   :  { %v269_v21 = vpack.c.bf16 %v193_v19, %v193_v19  ;;  %v737_v22 = vpack.c.bf16 %v193_v19, %v191_v13  ;;  %v396_v30 = vunpack.c.l.b16 %v284_v24 }
  0xc8   :  { %809 = vst [vmem:[#allocation8 + $0x8] sm:$0xff] %v737_v22   ;;  %v381_v23 = vunpack.c.l.b16 %v269_v21 }
  0xca   :  { %v411_v25 = vpack.c.b16 %v381_v23, %v380_v20 }
  0xcb   :  { %v233_v26 = vpop.f32.mrf.mxu2 }
  0xcc   :  { %v285_v27 = vpack.c.bf16 %v233_v26, %v233_v26  ;;  %v777_v28 = vpack.c.bf16 %v233_v26, %v231_v18  ;;  %503 = vmatmul.bf16.gmra.mxu1 %v411_v25 }
  0xcd   :  { %v196_v29 = vpop.f32.mrf.mxu0 }
  0xce   :  { %817 = vst [vmem:[#allocation8 + $0x48] sm:$0xff] %v777_v28   ;;  %v397_v31 = vunpack.c.l.b16 %v285_v27  ;;  %v270_v33 = vpack.c.bf16 %v196_v29, %v196_v29 }
  0xd0   :  { %v419_v32 = vpack.c.b16 %v397_v31, %v396_v30  ;;  %v382_v36 = vunpack.c.l.b16 %v270_v33 }
  0xd2   :  { %543 = vmatmul.bf16.gmra.mxu3 %v419_v32 }
  0xd3   :  { %v236_v34 = vpop.f32.mrf.mxu2 }
  0xd4   :  { %v286_v40 = vpack.c.bf16 %v236_v34, %v236_v34 }
  0xd5   :  { %v198_v35 = vpop.f32.mrf.mxu0 }
  0xd6   :  { %v271_v37 = vpack.c.bf16 %v198_v35, %v198_v35  ;;  %v742_v38 = vpack.c.bf16 %v198_v35, %v196_v29  ;;  %v398_v46 = vunpack.c.l.b16 %v286_v40 }
  0xd8   :  { %810 = vst [vmem:[#allocation8 + $0x10] sm:$0xff] %v742_v38   ;;  %v383_v39 = vunpack.c.l.b16 %v271_v37 }
  0xda   :  { %v412_v41 = vpack.c.b16 %v383_v39, %v382_v36 }
  0xdb   :  { %v238_v42 = vpop.f32.mrf.mxu2 }
  0xdc   :  { %v287_v43 = vpack.c.bf16 %v238_v42, %v238_v42  ;;  %v782_v44 = vpack.c.bf16 %v238_v42, %v236_v34  ;;  %508 = vmatmul.bf16.gmra.mxu1 %v412_v41 }
  0xdd   :  { %v201_v45 = vpop.f32.mrf.mxu0 }
  0xde   :  { %818 = vst [vmem:[#allocation8 + $0x50] sm:$0xff] %v782_v44   ;;  %v399_v47 = vunpack.c.l.b16 %v287_v43  ;;  %v272_v49 = vpack.c.bf16 %v201_v45, %v201_v45 }
  0xe0   :  { %v420_v48 = vpack.c.b16 %v399_v47, %v398_v46  ;;  %v384_v52 = vunpack.c.l.b16 %v272_v49 }
  0xe2   :  { %548 = vmatmul.bf16.gmra.mxu3 %v420_v48 }
  0xe3   :  { %v241_v50 = vpop.f32.mrf.mxu2 }
  0xe4   :  { %v288_v56 = vpack.c.bf16 %v241_v50, %v241_v50 }
  0xe5   :  { %v203_v51 = vpop.f32.mrf.mxu0 }
  0xe6   :  { %v273_v53 = vpack.c.bf16 %v203_v51, %v203_v51  ;;  %v747_v54 = vpack.c.bf16 %v203_v51, %v201_v45  ;;  %v400_v62 = vunpack.c.l.b16 %v288_v56 }
  0xe8   :  { %811 = vst [vmem:[#allocation8 + $0x18] sm:$0xff] %v747_v54   ;;  %v385_v55 = vunpack.c.l.b16 %v273_v53 }
  0xea   :  { %v413_v57 = vpack.c.b16 %v385_v55, %v384_v52 }
  0xeb   :  { %v243_v58 = vpop.f32.mrf.mxu2 }
  0xec   :  { %v289_v59 = vpack.c.bf16 %v243_v58, %v243_v58  ;;  %v787_v60 = vpack.c.bf16 %v243_v58, %v241_v50  ;;  %513 = vmatmul.bf16.gmra.mxu1 %v413_v57 }
  0xed   :  { %v206_v61 = vpop.f32.mrf.mxu0 }
  0xee   :  { %819 = vst [vmem:[#allocation8 + $0x58] sm:$0xff] %v787_v60   ;;  %v401_v63 = vunpack.c.l.b16 %v289_v59  ;;  %v274_v1 = vpack.c.bf16 %v206_v61, %v206_v61 }
  0xf0   :  { %v421_v0 = vpack.c.b16 %v401_v63, %v400_v62  ;;  %v386_v4 = vunpack.c.l.b16 %v274_v1 }
  0xf2   :  { %553 = vmatmul.bf16.gmra.mxu3 %v421_v0 }
  0xf3   :  { %v246_v2 = vpop.f32.mrf.mxu2 }
  0xf4   :  { %v290_v8 = vpack.c.bf16 %v246_v2, %v246_v2 }
  0xf5   :  { %v208_v3 = vpop.f32.mrf.mxu0 }
  0xf6   :  { %v275_v5 = vpack.c.bf16 %v208_v3, %v208_v3  ;;  %v752_v6 = vpack.c.bf16 %v208_v3, %v206_v61  ;;  %v402_v14 = vunpack.c.l.b16 %v290_v8 }
  0xf8   :  { %812 = vst [vmem:[#allocation8 + $0x20] sm:$0xff] %v752_v6   ;;  %v387_v7 = vunpack.c.l.b16 %v275_v5 }
  0xfa   :  { %v414_v9 = vpack.c.b16 %v387_v7, %v386_v4 }
  0xfb   :  { %v248_v10 = vpop.f32.mrf.mxu2 }
  0xfc   :  { %v291_v11 = vpack.c.bf16 %v248_v10, %v248_v10  ;;  %v792_v12 = vpack.c.bf16 %v248_v10, %v246_v2  ;;  %518 = vmatmul.bf16.gmra.mxu1 %v414_v9 }
  0xfd   :  { %v211_v13 = vpop.f32.mrf.mxu0 }
  0xfe   :  { %820 = vst [vmem:[#allocation8 + $0x60] sm:$0xff] %v792_v12   ;;  %v403_v15 = vunpack.c.l.b16 %v291_v11  ;;  %v276_v17 = vpack.c.bf16 %v211_v13, %v211_v13 }
 0x100   :  { %v422_v16 = vpack.c.b16 %v403_v15, %v402_v14  ;;  %v388_v20 = vunpack.c.l.b16 %v276_v17 }
 0x102   :  { %558 = vmatmul.bf16.gmra.mxu3 %v422_v16 }
 0x103   :  { %v251_v18 = vpop.f32.mrf.mxu2 }
 0x104   :  { %v292_v24 = vpack.c.bf16 %v251_v18, %v251_v18 }
 0x105   :  { %v213_v19 = vpop.f32.mrf.mxu0 }
 0x106   :  { %v277_v21 = vpack.c.bf16 %v213_v19, %v213_v19  ;;  %v757_v22 = vpack.c.bf16 %v213_v19, %v211_v13  ;;  %v404_v30 = vunpack.c.l.b16 %v292_v24 }
 0x108   :  { %813 = vst [vmem:[#allocation8 + $0x28] sm:$0xff] %v757_v22   ;;  %v389_v23 = vunpack.c.l.b16 %v277_v21 }
 0x10a   :  { %v415_v25 = vpack.c.b16 %v389_v23, %v388_v20 }
 0x10b   :  { %v253_v26 = vpop.f32.mrf.mxu2 }
 0x10c   :  { %v293_v27 = vpack.c.bf16 %v253_v26, %v253_v26  ;;  %v797_v28 = vpack.c.bf16 %v253_v26, %v251_v18  ;;  %523 = vmatmul.bf16.gmra.mxu1 %v415_v25 }
 0x10d   :  { %v216_v29 = vpop.f32.mrf.mxu0 }
 0x10e   :  { %821 = vst [vmem:[#allocation8 + $0x68] sm:$0xff] %v797_v28   ;;  %v405_v31 = vunpack.c.l.b16 %v293_v27  ;;  %v278_v33 = vpack.c.bf16 %v216_v29, %v216_v29 }
 0x110   :  { %v423_v32 = vpack.c.b16 %v405_v31, %v404_v30  ;;  %v390_v36 = vunpack.c.l.b16 %v278_v33 }
 0x112   :  { %563 = vmatmul.bf16.gmra.mxu3 %v423_v32 }
 0x113   :  { %v256_v34 = vpop.f32.mrf.mxu2 }
 0x114   :  { %v294_v40 = vpack.c.bf16 %v256_v34, %v256_v34 }
 0x115   :  { %v218_v35 = vpop.f32.mrf.mxu0 }
 0x116   :  { %v279_v37 = vpack.c.bf16 %v218_v35, %v218_v35  ;;  %v762_v38 = vpack.c.bf16 %v218_v35, %v216_v29  ;;  %v406_v46 = vunpack.c.l.b16 %v294_v40 }
 0x118   :  { %814 = vst [vmem:[#allocation8 + $0x30] sm:$0xff] %v762_v38   ;;  %v391_v39 = vunpack.c.l.b16 %v279_v37 }
 0x11a   :  { %v416_v41 = vpack.c.b16 %v391_v39, %v390_v36 }
 0x11b   :  { %v258_v42 = vpop.f32.mrf.mxu2 }
 0x11c   :  { %v295_v43 = vpack.c.bf16 %v258_v42, %v258_v42  ;;  %v802_v44 = vpack.c.bf16 %v258_v42, %v256_v34  ;;  %528 = vmatmul.bf16.gmra.mxu1 %v416_v41 }
 0x11d   :  { %v221_v45 = vpop.f32.mrf.mxu0 }
 0x11e   :  { %822 = vst [vmem:[#allocation8 + $0x70] sm:$0xff] %v802_v44   ;;  %v407_v47 = vunpack.c.l.b16 %v295_v43  ;;  %v280_v49 = vpack.c.bf16 %v221_v45, %v221_v45 }
 0x120   :  { %v424_v48 = vpack.c.b16 %v407_v47, %v406_v46  ;;  %v392_v52 = vunpack.c.l.b16 %v280_v49 }
 0x122   :  { %568 = vmatmul.bf16.gmra.mxu3 %v424_v48 }
 0x123   :  { %v261_v50 = vpop.f32.mrf.mxu2 }
 0x124   :  { %v296_v56 = vpack.c.bf16 %v261_v50, %v261_v50 }
 0x125   :  { %v223_v51 = vpop.f32.mrf.mxu0 }
 0x126   :  { %v281_v53 = vpack.c.bf16 %v223_v51, %v223_v51  ;;  %v767_v54 = vpack.c.bf16 %v223_v51, %v221_v45  ;;  %v408_v61 = vunpack.c.l.b16 %v296_v56 }
 0x128   :  { %815 = vst [vmem:[#allocation8 + $0x38] sm:$0xff] %v767_v54   ;;  %v393_v55 = vunpack.c.l.b16 %v281_v53 }
 0x12a   :  { %v417_v57 = vpack.c.b16 %v393_v55, %v392_v52 }
 0x12b   :  { %v263_v58 = vpop.f32.mrf.mxu2 }
 0x12c   :  { %v297_v59 = vpack.c.bf16 %v263_v58, %v263_v58  ;;  %v807_v60 = vpack.c.bf16 %v263_v58, %v261_v50  ;;  %533 = vmatmul.bf16.gmra.mxu1 %v417_v57 }
 0x12e   :  { %823 = vst [vmem:[#allocation8 + $0x78] sm:$0xff] %v807_v60   ;;  %v409_v62 = vunpack.c.l.b16 %v297_v59 }
 0x12f   :  { %623 = dma.vmem_to_hbm [thread:$0]  %s616_s6, 2048, %s618_s9, [#allocation4], %s978_s23, %s978_s23, %s979_s24  }
 0x130   :  { %v425_v63 = vpack.c.b16 %v409_v62, %v408_v61 }
 0x132   :  { %573 = vmatmul.bf16.gmra.mxu3 %v425_v63 }
 0x139   :  { %v499_v0 = vpop.f32.mrf.mxu1 }
 0x13a   :  { %579 = vst [vmem:[#allocation9] sm:$0xff] %v499_v0 }
 0x141   :  { %v501_v1 = vpop.f32.mrf.mxu1 }
 0x142   :  { %580 = vst [vmem:[#allocation9 + $0x8] sm:$0xff] %v501_v1 }
 0x145   :  { %v539_v2 = vpop.f32.mrf.mxu3 }
 0x146   :  { %595 = vst [vmem:[#allocation9 + $0x80] sm:$0xff] %v539_v2 }
 0x149   :  { %v504_v3 = vpop.f32.mrf.mxu1 }
 0x14a   :  { %581 = vst [vmem:[#allocation9 + $0x10] sm:$0xff] %v504_v3 }
 0x14d   :  { %v541_v4 = vpop.f32.mrf.mxu3 }
 0x14e   :  { %596 = vst [vmem:[#allocation9 + $0x88] sm:$0xff] %v541_v4 }
 0x151   :  { %v506_v5 = vpop.f32.mrf.mxu1 }
 0x152   :  { %582 = vst [vmem:[#allocation9 + $0x18] sm:$0xff] %v506_v5 }
 0x155   :  { %v544_v6 = vpop.f32.mrf.mxu3 }
 0x156   :  { %597 = vst [vmem:[#allocation9 + $0x90] sm:$0xff] %v544_v6 }
 0x159   :  { %v509_v7 = vpop.f32.mrf.mxu1 }
 0x15a   :  { %583 = vst [vmem:[#allocation9 + $0x20] sm:$0xff] %v509_v7 }
 0x15d   :  { %v546_v8 = vpop.f32.mrf.mxu3 }
 0x15e   :  { %598 = vst [vmem:[#allocation9 + $0x98] sm:$0xff] %v546_v8 }
 0x161   :  { %v511_v9 = vpop.f32.mrf.mxu1 }
 0x162   :  { %584 = vst [vmem:[#allocation9 + $0x28] sm:$0xff] %v511_v9 }
 0x165   :  { %v549_v10 = vpop.f32.mrf.mxu3 }
 0x166   :  { %599 = vst [vmem:[#allocation9 + $0xa0] sm:$0xff] %v549_v10 }
 0x169   :  { %v514_v11 = vpop.f32.mrf.mxu1 }
 0x16a   :  { %585 = vst [vmem:[#allocation9 + $0x30] sm:$0xff] %v514_v11 }
 0x16d   :  { %v551_v12 = vpop.f32.mrf.mxu3 }
 0x16e   :  { %600 = vst [vmem:[#allocation9 + $0xa8] sm:$0xff] %v551_v12 }
 0x171   :  { %v516_v13 = vpop.f32.mrf.mxu1 }
 0x172   :  { %586 = vst [vmem:[#allocation9 + $0x38] sm:$0xff] %v516_v13 }
 0x175   :  { %v554_v14 = vpop.f32.mrf.mxu3 }
 0x176   :  { %601 = vst [vmem:[#allocation9 + $0xb0] sm:$0xff] %v554_v14 }
 0x179   :  { %v519_v15 = vpop.f32.mrf.mxu1 }
 0x17a   :  { %587 = vst [vmem:[#allocation9 + $0x40] sm:$0xff] %v519_v15 }
 0x17d   :  { %v556_v16 = vpop.f32.mrf.mxu3 }
 0x17e   :  { %602 = vst [vmem:[#allocation9 + $0xb8] sm:$0xff] %v556_v16 }
 0x181   :  { %v521_v17 = vpop.f32.mrf.mxu1 }
 0x182   :  { %588 = vst [vmem:[#allocation9 + $0x48] sm:$0xff] %v521_v17 }
 0x185   :  { %v559_v18 = vpop.f32.mrf.mxu3 }
 0x186   :  { %603 = vst [vmem:[#allocation9 + $0xc0] sm:$0xff] %v559_v18 }
 0x189   :  { %v524_v19 = vpop.f32.mrf.mxu1 }
 0x18a   :  { %589 = vst [vmem:[#allocation9 + $0x50] sm:$0xff] %v524_v19 }
 0x18d   :  { %v561_v20 = vpop.f32.mrf.mxu3 }
 0x18e   :  { %604 = vst [vmem:[#allocation9 + $0xc8] sm:$0xff] %v561_v20 }
 0x191   :  { %v526_v21 = vpop.f32.mrf.mxu1 }
 0x192   :  { %590 = vst [vmem:[#allocation9 + $0x58] sm:$0xff] %v526_v21 }
 0x195   :  { %v564_v22 = vpop.f32.mrf.mxu3 }
 0x196   :  { %605 = vst [vmem:[#allocation9 + $0xd0] sm:$0xff] %v564_v22 }
 0x199   :  { %v529_v23 = vpop.f32.mrf.mxu1 }
 0x19a   :  { %591 = vst [vmem:[#allocation9 + $0x60] sm:$0xff] %v529_v23 }
 0x19d   :  { %v566_v24 = vpop.f32.mrf.mxu3 }
 0x19e   :  { %606 = vst [vmem:[#allocation9 + $0xd8] sm:$0xff] %v566_v24 }
 0x1a1   :  { %v531_v25 = vpop.f32.mrf.mxu1 }
 0x1a2   :  { %592 = vst [vmem:[#allocation9 + $0x68] sm:$0xff] %v531_v25 }
 0x1a5   :  { %v569_v26 = vpop.f32.mrf.mxu3 }
 0x1a6   :  { %607 = vst [vmem:[#allocation9 + $0xe0] sm:$0xff] %v569_v26 }
 0x1a9   :  { %v534_v27 = vpop.f32.mrf.mxu1 }
 0x1aa   :  { %593 = vst [vmem:[#allocation9 + $0x70] sm:$0xff] %v534_v27 }
 0x1ad   :  { %v571_v28 = vpop.f32.mrf.mxu3 }
 0x1ae   :  { %608 = vst [vmem:[#allocation9 + $0xe8] sm:$0xff] %v571_v28 }
 0x1b1   :  { %v536_v29 = vpop.f32.mrf.mxu1 }
 0x1b2   :  { %594 = vst [vmem:[#allocation9 + $0x78] sm:$0xff] %v536_v29 }
 0x1b5   :  { %v574_v30 = vpop.f32.mrf.mxu3 }
 0x1b6   :  { %609 = vst [vmem:[#allocation9 + $0xf0] sm:$0xff] %v574_v30 }
 0x1bd   :  { %v576_v31 = vpop.f32.mrf.mxu3 }
 0x1be   :  { %610 = vst [vmem:[#allocation9 + $0xf8] sm:$0xff] %v576_v31 }
 0x1bf   :  { %636 = dma.vmem_to_hbm [thread:$0]  %s629_s10, 4096, %s631_s13, [#allocation10], %s981_s1, %s981_s1, %s982_s27  }
 0x1c0   :  { %973 = dma.done.wait [#allocation4], 2048  }
 0x1c1   :  { %974 = vsyncadd [#allocation4], 4294965248 }
 0x1c2   :  { %975 = dma.done.wait [#allocation10], 4096  }
 0x1c3   :  { %976 = vsyncadd [#allocation10], 4294963200 }
 0x1c4   :  { %645 = vsyncpa [#allocation3], 1 }
 0x1c5   :  { %646 = vsyncpa [#allocation6], 1 }
 0x1c6   :  { %647 = vsyncpa [#allocation4], 1 }
 0x1c7   :  { %648 = vsyncpa [#allocation10], 1 }

</bundles_post_ra>
